<compile_context>
chip_gen: v5e
topology: v5e:2x2
jax: 0.10.0
libtpu: 0.0.40
codegen_flags: <defaults>
</compile_context>

<pallas_src>
import functools

import jax
import jax.numpy as jnp
from jax.experimental import pallas as pl
from jax.experimental.pallas import tpu as pltpu


# ------------------------------ Pallas kernel ------------------------------

def _stacked_lstm_seq_kernel(x_ref, h0_ref, c0_ref, *rest, num_layers, hidden):
    """One grid step == one time step through all stacked LSTMCell layers.

    rest = (wx_0, wh_0, b_0, ..., wx_{L-1}, wh_{L-1}, b_{L-1},
            out_ref, h_scr, c_scr)
      wx_l : (in_l, 4H) bf16   pre-transposed W_ih, gate cols (i,f,o,g)
      wh_l : (H,   4H) bf16    pre-transposed W_hh, gate cols (i,f,o,g)
      b_l  : (1,   4H) f32     b_ih + b_hh, gate cols (i,f,o,g)
      out_ref : (B, 2*L*H)     packed per-step state [h_0..h_{L-1} | c_0..c_{L-1}]
      h_scr / c_scr : (L,B,H)  f32 recurrent state, persistent VMEM scratch
    """
    L, H = num_layers, hidden
    w_refs = rest[:3 * L]
    out_ref, h_scr, c_scr = rest[3 * L:]

    # Initialize the resident recurrent state from the provided (h0, c0) once.
    @pl.when(pl.program_id(0) == 0)
    def _():
        h_scr[...] = h0_ref[...]
        c_scr[...] = c0_ref[...]

    x = x_ref[...].astype(jnp.bfloat16)                     # (B, in_0)

    # Static Python unroll over layers -> full LLO scheduling visibility.
    for layer in range(L):
        wx_ref, wh_ref, b_ref = w_refs[3 * layer:3 * layer + 3]
        h = h_scr[layer]                                    # (B, H) f32
        c = c_scr[layer]                                    # (B, H) f32

        # Two accumulating MXU dots (no lane-axis concat), bf16 in / f32 acc.
        gates = (jnp.dot(x, wx_ref[...], preferred_element_type=jnp.float32)
                 + jnp.dot(h.astype(jnp.bfloat16), wh_ref[...],
                           preferred_element_type=jnp.float32)
                 + b_ref[...])                              # (B, 4H) f32

        # Gate columns pre-ordered (i, f, o, g): sigmoid on the first 3H,
        # tanh only on the last H.
        sig = jax.nn.sigmoid(gates[:, :3 * H])
        i_g = sig[:, 0 * H:1 * H]
        f_g = sig[:, 1 * H:2 * H]
        o_g = sig[:, 2 * H:3 * H]
        g_g = jnp.tanh(gates[:, 3 * H:])

        c_new = f_g * c + i_g * g_g
        h_new = o_g * jnp.tanh(c_new)

        # Keep recurrent state resident in VMEM scratch for the next step.
        h_scr[layer] = h_new
        c_scr[layer] = c_new

        # Lane-dense packed writeback slab: [h_0..h_{L-1} | c_0..c_{L-1}].
        out_ref[:, layer * H:(layer + 1) * H] = h_new
        out_ref[:, (L + layer) * H:(L + layer + 1) * H] = c_new

        # Inter-layer dropout is identity (eval mode / p == 0).
        # TODO(synk): training-mode dropout (p > 0) between layers not implemented.
        x = h_new.astype(jnp.bfloat16)


# --------------------------------- wrappers ----------------------------------

@jax.jit
def stacked_lstm_sequence(params, xs, h0, c0):
    """Run the StackedLSTM cell over a whole sequence inside one pallas_call.

    xs : (T, B, I)   per-step inputs
    h0, c0 : (L, B, H)
    Returns: ys (T, B, H) = last-layer h per step, (h1, c1) final state (L,B,H).
    """
    T, B, I = xs.shape
    L, _, H = h0.shape
    kernel = functools.partial(_stacked_lstm_seq_kernel, num_layers=L, hidden=H)

    wb = []
    in_specs = [
        pl.BlockSpec((None, B, I), lambda t: (t, 0, 0)),       # x_t streamed per step
        pl.BlockSpec((L, B, H), lambda t: (0, 0, 0)),          # h0 (loaded once)
        pl.BlockSpec((L, B, H), lambda t: (0, 0, 0)),          # c0 (loaded once)
    ]
    for p in params["layers"]:
        for name in ("wx", "wh", "b"):
            wb.append(p[name])
            # Constant index_map -> weights DMA'd once and stay resident in VMEM.
            in_specs.append(pl.BlockSpec(p[name].shape, lambda t: (0, 0)))

    state_seq = pl.pallas_call(
        kernel,
        out_shape=jax.ShapeDtypeStruct((T, B, 2 * L * H), jnp.float32),
        grid=(T,),
        in_specs=in_specs,
        out_specs=pl.BlockSpec((None, B, 2 * L * H), lambda t: (t, 0, 0)),
        scratch_shapes=[pltpu.VMEM((L, B, H), jnp.float32),    # h state
                        pltpu.VMEM((L, B, H), jnp.float32)],   # c state
        compiler_params=pltpu.CompilerParams(
            dimension_semantics=("arbitrary",)),               # time is sequential
    )(xs, h0, c0, *wb)

    # Layout plumbing only (outside the kernel): unpack the lane-dense slab.
    hs = state_seq[:, :, :L * H].reshape(T, B, L, H).transpose(0, 2, 1, 3)  # (T,L,B,H)
    cs = state_seq[:, :, L * H:].reshape(T, B, L, H).transpose(0, 2, 1, 3)
    ys = hs[:, L - 1]          # last layer's h at every step (no dropout after last layer)
    h1 = hs[-1]                # (L, B, H)
    c1 = cs[-1]
    return ys, (h1, c1)


def stacked_lstm_forward(params, x, h0, c0):
    """Exact PyTorch StackedLSTM.forward semantics: a single time step."""
    ys, (h1, c1) = stacked_lstm_sequence(params, x[None], h0, c0)
    return ys[0], (h1, c1)


# ------------------------------- parameters ---------------------------------

def make_params(key, *, input_size, hidden_size, num_layers):
    """PyTorch-style LSTMCell init, pre-fused/reordered/cast for the kernel."""
    H = hidden_size
    scale = H ** -0.5
    keys = jax.random.split(key, 4 * num_layers)
    uni = lambda k, shp: jax.random.uniform(k, shp, jnp.float32, -scale, scale)

    def reorder_ifog(a):
        # PyTorch gate block order (i, f, g, o) -> kernel order (i, f, o, g)
        i, f, g, o = jnp.split(a, 4, axis=0)
        return jnp.concatenate([i, f, o, g], axis=0)

    layers = []
    in_size = input_size
    for l in range(num_layers):
        k_ih, k_hh, k_bih, k_bhh = keys[4 * l:4 * l + 4]
        w_ih = uni(k_ih, (4 * H, in_size))          # PyTorch layout (4H, in)
        w_hh = uni(k_hh, (4 * H, H))                # (4H, H)
        b_ih = uni(k_bih, (4 * H,))
        b_hh = uni(k_bhh, (4 * H,))
        layers.append({
            # Pre-transposed, gate-reordered, bf16 MXU operands.
            "wx": reorder_ifog(w_ih).T.astype(jnp.bfloat16),   # (in, 4H)
            "wh": reorder_ifog(w_hh).T.astype(jnp.bfloat16),   # (H, 4H)
            # Fused bias, kept f32 (added to the f32 accumulator).
            "b": (reorder_ifog(b_ih) + reorder_ifog(b_hh))[None, :],  # (1, 4H)
        })
        in_size = H
    return {"layers": layers}


# ------------------------------ pure-JAX check -------------------------------

def _reference_forward_sequence(params, xs, h0, c0):
    """Pure-JAX reference with identical math (bf16 operands, f32 accum)."""
    T, B, _ = xs.shape
    L, _, H = h0.shape
    h = [h0[l] for l in range(L)]
    c = [c0[l] for l in range(L)]
    ys = []
    for t in range(T):
        inp = xs[t]
        for l in range(L):
            p = params["layers"][l]
            gates = (jnp.dot(inp.astype(jnp.bfloat16), p["wx"],
                             preferred_element_type=jnp.float32)
                     + jnp.dot(h[l].astype(jnp.bfloat16), p["wh"],
                               preferred_element_type=jnp.float32)
                     + p["b"])
            i_g = jax.nn.sigmoid(gates[:, 0 * H:1 * H])
            f_g = jax.nn.sigmoid(gates[:, 1 * H:2 * H])
            o_g = jax.nn.sigmoid(gates[:, 2 * H:3 * H])
            g_g = jnp.tanh(gates[:, 3 * H:4 * H])
            c[l] = f_g * c[l] + i_g * g_g
            h[l] = o_g * jnp.tanh(c[l])
            inp = h[l]
        ys.append(inp)
    return jnp.stack(ys), (jnp.stack(h), jnp.stack(c))


# ----------------------------------- main ------------------------------------

if __name__ == "__main__":
    BATCH = 8
    INPUT = 32
    HIDDEN = 32
    LAYERS = 2
    SEQ = 8

    key = jax.random.PRNGKey(0)
    k_par, k_x, k_h, k_c = jax.random.split(key, 4)

    params = make_params(k_par, input_size=INPUT, hidden_size=HIDDEN,
                         num_layers=LAYERS)
    xs = jax.random.normal(k_x, (SEQ, BATCH, INPUT), jnp.float32)
    h0 = jax.random.normal(k_h, (LAYERS, BATCH, HIDDEN), jnp.float32)
    c0 = jax.random.normal(k_c, (LAYERS, BATCH, HIDDEN), jnp.float32)

    # Fused multi-step run: the recurrence loop lives inside the kernel.
    ys, (h1, c1) = stacked_lstm_sequence(params, xs, h0, c0)
    jax.block_until_ready(ys)
    jax.block_until_ready(h1)
    jax.block_until_ready(c1)

    assert ys.shape == (SEQ, BATCH, HIDDEN)
    assert h1.shape == (LAYERS, BATCH, HIDDEN)
    assert c1.shape == (LAYERS, BATCH, HIDDEN)
    assert bool(jnp.all(jnp.isfinite(ys)))

    # Tight-ish tolerance: both paths use bf16 MXU operands with f32 accumulation
    # and identical op order, so remaining diffs are transcendental ULP-level.
    ref_ys, (ref_h1, ref_c1) = _reference_forward_sequence(params, xs, h0, c0)
    assert bool(jnp.allclose(ys, ref_ys, rtol=2e-3, atol=2e-3))
    assert bool(jnp.allclose(h1, ref_h1, rtol=2e-3, atol=2e-3))
    assert bool(jnp.allclose(c1, ref_c1, rtol=2e-3, atol=2e-3))

    # Single-step call matching the PyTorch module's forward() exactly (T == 1).
    out1, (h1_s, c1_s) = stacked_lstm_forward(params, xs[0], h0, c0)
    jax.block_until_ready(out1)
    assert out1.shape == (BATCH, HIDDEN)
    ref1_ys, (ref1_h, ref1_c) = _reference_forward_sequence(params, xs[:1], h0, c0)
    assert bool(jnp.allclose(out1, ref1_ys[0], rtol=2e-3, atol=2e-3))
    assert bool(jnp.allclose(h1_s, ref1_h, rtol=2e-3, atol=2e-3))
    assert bool(jnp.allclose(c1_s, ref1_c, rtol=2e-3, atol=2e-3))

    print("KERNEL_OK")
</pallas_src>

<mosaic_0001>
module attributes {stable_mosaic.version = 11 : i64} {
  func.func @_stacked_lstm_seq_kernel(%arg0: i32, %arg1: memref<1x8x32xf32, #tpu.memory_space<vmem>>, %arg2: memref<2x8x32xf32, #tpu.memory_space<vmem>>, %arg3: memref<2x8x32xf32, #tpu.memory_space<vmem>>, %arg4: memref<32x128xbf16, #tpu.memory_space<vmem>>, %arg5: memref<32x128xbf16, #tpu.memory_space<vmem>>, %arg6: memref<1x128xf32, #tpu.memory_space<vmem>>, %arg7: memref<32x128xbf16, #tpu.memory_space<vmem>>, %arg8: memref<32x128xbf16, #tpu.memory_space<vmem>>, %arg9: memref<1x128xf32, #tpu.memory_space<vmem>>, %arg10: memref<1x8x128xf32, #tpu.memory_space<vmem>>, %arg11: memref<2x8x32xf32, #tpu.memory_space<vmem>>, %arg12: memref<2x8x32xf32, #tpu.memory_space<vmem>>) attributes {dimension_semantics = [#tpu.dimension_semantics<arbitrary>], iteration_bounds = array<i64: 8>, scalar_prefetch = 0 : i64, scratch_operands = 2 : i64, tpu.core_type = #tpu.core_type<tc>, window_params = [{transform_indices = @transform_0, window_bounds = array<i64: 1, 8, 32>}, {pipeline_mode = #tpu.pipeline_mode<synchronous>, transform_indices = @transform_1, window_bounds = array<i64: 2, 8, 32>}, {pipeline_mode = #tpu.pipeline_mode<synchronous>, transform_indices = @transform_2, window_bounds = array<i64: 2, 8, 32>}, {pipeline_mode = #tpu.pipeline_mode<synchronous>, transform_indices = @transform_3, window_bounds = array<i64: 32, 128>}, {pipeline_mode = #tpu.pipeline_mode<synchronous>, transform_indices = @transform_4, window_bounds = array<i64: 32, 128>}, {pipeline_mode = #tpu.pipeline_mode<synchronous>, transform_indices = @transform_5, window_bounds = array<i64: 1, 128>}, {pipeline_mode = #tpu.pipeline_mode<synchronous>, transform_indices = @transform_6, window_bounds = array<i64: 32, 128>}, {pipeline_mode = #tpu.pipeline_mode<synchronous>, transform_indices = @transform_7, window_bounds = array<i64: 32, 128>}, {pipeline_mode = #tpu.pipeline_mode<synchronous>, transform_indices = @transform_8, window_bounds = array<i64: 1, 128>}, {transform_indices = @transform_9, window_bounds = array<i64: 1, 8, 128>}]} {
    %c0_i32 = arith.constant 0 : i32
    %0 = arith.cmpi eq, %arg0, %c0_i32 : i32
    %1 = arith.extui %0 : i1 to i32
    %c0_i32_0 = arith.constant 0 : i32
    %2 = arith.cmpi ne, %1, %c0_i32_0 : i32
    scf.if %2 {
      %c0_52 = arith.constant 0 : index
      %c0_53 = arith.constant 0 : index
      %c0_54 = arith.constant 0 : index
      %89 = vector.load %arg2[%c0_52, %c0_53, %c0_54] : memref<2x8x32xf32, #tpu.memory_space<vmem>>, vector<2x8x32xf32>
      %c0_55 = arith.constant 0 : index
      %c0_56 = arith.constant 0 : index
      %c0_57 = arith.constant 0 : index
      %90 = vector.load %arg11[%c0_55, %c0_56, %c0_57] : memref<2x8x32xf32, #tpu.memory_space<vmem>>, vector<2x8x32xf32>
      tpu.vector_store %arg11[%c0_55, %c0_56, %c0_57], %89 {strides = array<i32>} : memref<2x8x32xf32, #tpu.memory_space<vmem>>, vector<2x8x32xf32>,
      %c0_58 = arith.constant 0 : index
      %c0_59 = arith.constant 0 : index
      %c0_60 = arith.constant 0 : index
      %91 = vector.load %arg3[%c0_58, %c0_59, %c0_60] : memref<2x8x32xf32, #tpu.memory_space<vmem>>, vector<2x8x32xf32>
      %c0_61 = arith.constant 0 : index
      %c0_62 = arith.constant 0 : index
      %c0_63 = arith.constant 0 : index
      %92 = vector.load %arg12[%c0_61, %c0_62, %c0_63] : memref<2x8x32xf32, #tpu.memory_space<vmem>>, vector<2x8x32xf32>
      tpu.vector_store %arg12[%c0_61, %c0_62, %c0_63], %91 {strides = array<i32>} : memref<2x8x32xf32, #tpu.memory_space<vmem>>, vector<2x8x32xf32>,
    } else {
    }
    %c0 = arith.constant 0 : index
    %c0_1 = arith.constant 0 : index
    %c0_2 = arith.constant 0 : index
    %3 = vector.load %arg1[%c0, %c0_1, %c0_2] : memref<1x8x32xf32, #tpu.memory_space<vmem>>, vector<1x8x32xf32>
    %4 = vector.shape_cast %3 : vector<1x8x32xf32> to vector<8x32xf32>
    %5 = arith.truncf %4 : vector<8x32xf32> to vector<8x32xbf16>
    %c0_3 = arith.constant 0 : index
    %c0_4 = arith.constant 0 : index
    %c0_5 = arith.constant 0 : index
    %6 = vector.load %arg11[%c0_3, %c0_4, %c0_5] : memref<2x8x32xf32, #tpu.memory_space<vmem>>, vector<1x8x32xf32>
    %7 = vector.shape_cast %6 : vector<1x8x32xf32> to vector<8x32xf32>
    %c0_6 = arith.constant 0 : index
    %c0_7 = arith.constant 0 : index
    %c0_8 = arith.constant 0 : index
    %8 = vector.load %arg12[%c0_6, %c0_7, %c0_8] : memref<2x8x32xf32, #tpu.memory_space<vmem>>, vector<1x8x32xf32>
    %9 = vector.shape_cast %8 : vector<1x8x32xf32> to vector<8x32xf32>
    %c0_9 = arith.constant 0 : index
    %c0_10 = arith.constant 0 : index
    %10 = vector.load %arg4[%c0_9, %c0_10] : memref<32x128xbf16, #tpu.memory_space<vmem>>, vector<32x128xbf16>
    %cst = arith.constant dense<0.000000e+00> : vector<8x128xf32>
    %11 = tpu.matmul %5, %10, %cst {dimension_numbers = #tpu.dot_dimension_numbers<[1], [0], [0], [1], [0, 0, 1, 1], [], []>} : vector<8x32xbf16>, vector<32x128xbf16>, vector<8x128xf32> -> vector<8x128xf32>
    %12 = arith.truncf %7 : vector<8x32xf32> to vector<8x32xbf16>
    %c0_11 = arith.constant 0 : index
    %c0_12 = arith.constant 0 : index
    %13 = vector.load %arg5[%c0_11, %c0_12] : memref<32x128xbf16, #tpu.memory_space<vmem>>, vector<32x128xbf16>
    %cst_13 = arith.constant dense<0.000000e+00> : vector<8x128xf32>
    %14 = tpu.matmul %12, %13, %cst_13 {dimension_numbers = #tpu.dot_dimension_numbers<[1], [0], [0], [1], [0, 0, 1, 1], [], []>} : vector<8x32xbf16>, vector<32x128xbf16>, vector<8x128xf32> -> vector<8x128xf32>
    %15 = arith.addf %11, %14 : vector<8x128xf32>
    %c0_14 = arith.constant 0 : index
    %c0_15 = arith.constant 0 : index
    %16 = vector.load %arg6[%c0_14, %c0_15] : memref<1x128xf32, #tpu.memory_space<vmem>>, vector<1x128xf32>
    %17 = vector.broadcast %16 : vector<1x128xf32> to vector<8x128xf32>
    %18 = arith.addf %15, %17 : vector<8x128xf32>
    %19 = vector.extract_strided_slice %18 {offsets = [0, 0], sizes = [8, 96], strides = [1, 1]} : vector<8x128xf32> to vector<8x96xf32>
    %20 = arith.negf %19 : vector<8x96xf32>
    %21 = math.exp %20 : vector<8x96xf32>
    %cst_16 = arith.constant 1.000000e+00 : f32
    %22 = vector.broadcast %cst_16 : f32 to vector<8x96xf32>
    %23 = arith.addf %22, %21 : vector<8x96xf32>
    %24 = arith.divf %22, %23 : vector<8x96xf32>
    %25 = vector.extract_strided_slice %24 {offsets = [0, 0], sizes = [8, 32], strides = [1, 1]} : vector<8x96xf32> to vector<8x32xf32>
    %26 = vector.extract_strided_slice %24 {offsets = [0, 32], sizes = [8, 32], strides = [1, 1]} : vector<8x96xf32> to vector<8x32xf32>
    %27 = vector.extract_strided_slice %24 {offsets = [0, 64], sizes = [8, 32], strides = [1, 1]} : vector<8x96xf32> to vector<8x32xf32>
    %28 = vector.extract_strided_slice %18 {offsets = [0, 96], sizes = [8, 32], strides = [1, 1]} : vector<8x128xf32> to vector<8x32xf32>
    %29 = math.tanh %28 : vector<8x32xf32>
    %30 = arith.mulf %26, %9 : vector<8x32xf32>
    %31 = arith.mulf %25, %29 : vector<8x32xf32>
    %32 = arith.addf %30, %31 : vector<8x32xf32>
    %33 = math.tanh %32 : vector<8x32xf32>
    %34 = arith.mulf %27, %33 : vector<8x32xf32>
    %c0_17 = arith.constant 0 : index
    %c0_18 = arith.constant 0 : index
    %c0_19 = arith.constant 0 : index
    %35 = vector.load %arg11[%c0_17, %c0_18, %c0_19] : memref<2x8x32xf32, #tpu.memory_space<vmem>>, vector<1x8x32xf32>
    %36 = vector.shape_cast %35 : vector<1x8x32xf32> to vector<8x32xf32>
    %37 = vector.shape_cast %34 : vector<8x32xf32> to vector<1x8x32xf32>
    tpu.vector_store %arg11[%c0_17, %c0_18, %c0_19], %37 {strides = array<i32>} : memref<2x8x32xf32, #tpu.memory_space<vmem>>, vector<1x8x32xf32>,
    %c0_20 = arith.constant 0 : index
    %c0_21 = arith.constant 0 : index
    %c0_22 = arith.constant 0 : index
    %38 = vector.load %arg12[%c0_20, %c0_21, %c0_22] : memref<2x8x32xf32, #tpu.memory_space<vmem>>, vector<1x8x32xf32>
    %39 = vector.shape_cast %38 : vector<1x8x32xf32> to vector<8x32xf32>
    %40 = vector.shape_cast %32 : vector<8x32xf32> to vector<1x8x32xf32>
    tpu.vector_store %arg12[%c0_20, %c0_21, %c0_22], %40 {strides = array<i32>} : memref<2x8x32xf32, #tpu.memory_space<vmem>>, vector<1x8x32xf32>,
    %c0_23 = arith.constant 0 : index
    %c0_24 = arith.constant 0 : index
    %c0_25 = arith.constant 0 : index
    %41 = vector.load %arg10[%c0_23, %c0_24, %c0_25] : memref<1x8x128xf32, #tpu.memory_space<vmem>>, vector<1x8x32xf32>
    %42 = vector.shape_cast %41 : vector<1x8x32xf32> to vector<8x32xf32>
    %43 = vector.shape_cast %34 : vector<8x32xf32> to vector<1x8x32xf32>
    tpu.vector_store %arg10[%c0_23, %c0_24, %c0_25], %43 {strides = array<i32>} : memref<1x8x128xf32, #tpu.memory_space<vmem>>, vector<1x8x32xf32>,
    %c0_26 = arith.constant 0 : index
    %c0_27 = arith.constant 0 : index
    %c64 = arith.constant 64 : index
    %44 = vector.load %arg10[%c0_26, %c0_27, %c64] : memref<1x8x128xf32, #tpu.memory_space<vmem>>, vector<1x8x32xf32>
    %45 = vector.shape_cast %44 : vector<1x8x32xf32> to vector<8x32xf32>
    %46 = vector.shape_cast %32 : vector<8x32xf32> to vector<1x8x32xf32>
    tpu.vector_store %arg10[%c0_26, %c0_27, %c64], %46 {strides = array<i32>} : memref<1x8x128xf32, #tpu.memory_space<vmem>>, vector<1x8x32xf32>,
    %47 = arith.truncf %34 : vector<8x32xf32> to vector<8x32xbf16>
    %c1 = arith.constant 1 : index
    %c0_28 = arith.constant 0 : index
    %c0_29 = arith.constant 0 : index
    %48 = vector.load %arg11[%c1, %c0_28, %c0_29] : memref<2x8x32xf32, #tpu.memory_space<vmem>>, vector<1x8x32xf32>
    %49 = vector.shape_cast %48 : vector<1x8x32xf32> to vector<8x32xf32>
    %c1_30 = arith.constant 1 : index
    %c0_31 = arith.constant 0 : index
    %c0_32 = arith.constant 0 : index
    %50 = vector.load %arg12[%c1_30, %c0_31, %c0_32] : memref<2x8x32xf32, #tpu.memory_space<vmem>>, vector<1x8x32xf32>
    %51 = vector.shape_cast %50 : vector<1x8x32xf32> to vector<8x32xf32>
    %c0_33 = arith.constant 0 : index
    %c0_34 = arith.constant 0 : index
    %52 = vector.load %arg7[%c0_33, %c0_34] : memref<32x128xbf16, #tpu.memory_space<vmem>>, vector<32x128xbf16>
    %cst_35 = arith.constant dense<0.000000e+00> : vector<8x128xf32>
    %53 = tpu.matmul %47, %52, %cst_35 {dimension_numbers = #tpu.dot_dimension_numbers<[1], [0], [0], [1], [0, 0, 1, 1], [], []>} : vector<8x32xbf16>, vector<32x128xbf16>, vector<8x128xf32> -> vector<8x128xf32>
    %54 = arith.truncf %49 : vector<8x32xf32> to vector<8x32xbf16>
    %c0_36 = arith.constant 0 : index
    %c0_37 = arith.constant 0 : index
    %55 = vector.load %arg8[%c0_36, %c0_37] : memref<32x128xbf16, #tpu.memory_space<vmem>>, vector<32x128xbf16>
    %cst_38 = arith.constant dense<0.000000e+00> : vector<8x128xf32>
    %56 = tpu.matmul %54, %55, %cst_38 {dimension_numbers = #tpu.dot_dimension_numbers<[1], [0], [0], [1], [0, 0, 1, 1], [], []>} : vector<8x32xbf16>, vector<32x128xbf16>, vector<8x128xf32> -> vector<8x128xf32>
    %57 = arith.addf %53, %56 : vector<8x128xf32>
    %c0_39 = arith.constant 0 : index
    %c0_40 = arith.constant 0 : index
    %58 = vector.load %arg9[%c0_39, %c0_40] : memref<1x128xf32, #tpu.memory_space<vmem>>, vector<1x128xf32>
    %59 = vector.broadcast %58 : vector<1x128xf32> to vector<8x128xf32>
    %60 = arith.addf %57, %59 : vector<8x128xf32>
    %61 = vector.extract_strided_slice %60 {offsets = [0, 0], sizes = [8, 96], strides = [1, 1]} : vector<8x128xf32> to vector<8x96xf32>
    %62 = arith.negf %61 : vector<8x96xf32>
    %63 = math.exp %62 : vector<8x96xf32>
    %cst_41 = arith.constant 1.000000e+00 : f32
    %64 = vector.broadcast %cst_41 : f32 to vector<8x96xf32>
    %65 = arith.addf %64, %63 : vector<8x96xf32>
    %66 = arith.divf %64, %65 : vector<8x96xf32>
    %67 = vector.extract_strided_slice %66 {offsets = [0, 0], sizes = [8, 32], strides = [1, 1]} : vector<8x96xf32> to vector<8x32xf32>
    %68 = vector.extract_strided_slice %66 {offsets = [0, 32], sizes = [8, 32], strides = [1, 1]} : vector<8x96xf32> to vector<8x32xf32>
    %69 = vector.extract_strided_slice %66 {offsets = [0, 64], sizes = [8, 32], strides = [1, 1]} : vector<8x96xf32> to vector<8x32xf32>
    %70 = vector.extract_strided_slice %60 {offsets = [0, 96], sizes = [8, 32], strides = [1, 1]} : vector<8x128xf32> to vector<8x32xf32>
    %71 = math.tanh %70 : vector<8x32xf32>
    %72 = arith.mulf %68, %51 : vector<8x32xf32>
    %73 = arith.mulf %67, %71 : vector<8x32xf32>
    %74 = arith.addf %72, %73 : vector<8x32xf32>
    %75 = math.tanh %74 : vector<8x32xf32>
    %76 = arith.mulf %69, %75 : vector<8x32xf32>
    %c1_42 = arith.constant 1 : index
    %c0_43 = arith.constant 0 : index
    %c0_44 = arith.constant 0 : index
    %77 = vector.load %arg11[%c1_42, %c0_43, %c0_44] : memref<2x8x32xf32, #tpu.memory_space<vmem>>, vector<1x8x32xf32>
    %78 = vector.shape_cast %77 : vector<1x8x32xf32> to vector<8x32xf32>
    %79 = vector.shape_cast %76 : vector<8x32xf32> to vector<1x8x32xf32>
    tpu.vector_store %arg11[%c1_42, %c0_43, %c0_44], %79 {strides = array<i32>} : memref<2x8x32xf32, #tpu.memory_space<vmem>>, vector<1x8x32xf32>,
    %c1_45 = arith.constant 1 : index
    %c0_46 = arith.constant 0 : index
    %c0_47 = arith.constant 0 : index
    %80 = vector.load %arg12[%c1_45, %c0_46, %c0_47] : memref<2x8x32xf32, #tpu.memory_space<vmem>>, vector<1x8x32xf32>
    %81 = vector.shape_cast %80 : vector<1x8x32xf32> to vector<8x32xf32>
    %82 = vector.shape_cast %74 : vector<8x32xf32> to vector<1x8x32xf32>
    tpu.vector_store %arg12[%c1_45, %c0_46, %c0_47], %82 {strides = array<i32>} : memref<2x8x32xf32, #tpu.memory_space<vmem>>, vector<1x8x32xf32>,
    %c0_48 = arith.constant 0 : index
    %c0_49 = arith.constant 0 : index
    %c32 = arith.constant 32 : index
    %83 = vector.load %arg10[%c0_48, %c0_49, %c32] : memref<1x8x128xf32, #tpu.memory_space<vmem>>, vector<1x8x32xf32>
    %84 = vector.shape_cast %83 : vector<1x8x32xf32> to vector<8x32xf32>
    %85 = vector.shape_cast %76 : vector<8x32xf32> to vector<1x8x32xf32>
    tpu.vector_store %arg10[%c0_48, %c0_49, %c32], %85 {strides = array<i32>} : memref<1x8x128xf32, #tpu.memory_space<vmem>>, vector<1x8x32xf32>,
    %c0_50 = arith.constant 0 : index
    %c0_51 = arith.constant 0 : index
    %c96 = arith.constant 96 : index
    %86 = vector.load %arg10[%c0_50, %c0_51, %c96] : memref<1x8x128xf32, #tpu.memory_space<vmem>>, vector<1x8x32xf32>
    %87 = vector.shape_cast %86 : vector<1x8x32xf32> to vector<8x32xf32>
    %88 = vector.shape_cast %74 : vector<8x32xf32> to vector<1x8x32xf32>
    tpu.vector_store %arg10[%c0_50, %c0_51, %c96], %88 {strides = array<i32>} : memref<1x8x128xf32, #tpu.memory_space<vmem>>, vector<1x8x32xf32>,
    return
  }
  func.func @transform_0(%arg0: i32) -> (i32, i32, i32) {
    %c0_i32 = arith.constant 0 : i32
    %c0_i32_0 = arith.constant 0 : i32
    %c0_i32_1 = arith.constant 0 : i32
    return %arg0, %c0_i32, %c0_i32_0 : i32, i32, i32
  }
  func.func @transform_1(%arg0: i32) -> (i32, i32, i32) {
    %c0_i32 = arith.constant 0 : i32
    %c0_i32_0 = arith.constant 0 : i32
    %c0_i32_1 = arith.constant 0 : i32
    %c0_i32_2 = arith.constant 0 : i32
    return %c0_i32, %c0_i32_0, %c0_i32_1 : i32, i32, i32
  }
  func.func @transform_2(%arg0: i32) -> (i32, i32, i32) {
    %c0_i32 = arith.constant 0 : i32
    %c0_i32_0 = arith.constant 0 : i32
    %c0_i32_1 = arith.constant 0 : i32
    %c0_i32_2 = arith.constant 0 : i32
    return %c0_i32, %c0_i32_0, %c0_i32_1 : i32, i32, i32
  }
  func.func @transform_3(%arg0: i32) -> (i32, i32) {
    %c0_i32 = arith.constant 0 : i32
    %c0_i32_0 = arith.constant 0 : i32
    %c0_i32_1 = arith.constant 0 : i32
    return %c0_i32, %c0_i32_0 : i32, i32
  }
  func.func @transform_4(%arg0: i32) -> (i32, i32) {
    %c0_i32 = arith.constant 0 : i32
    %c0_i32_0 = arith.constant 0 : i32
    %c0_i32_1 = arith.constant 0 : i32
    return %c0_i32, %c0_i32_0 : i32, i32
  }
  func.func @transform_5(%arg0: i32) -> (i32, i32) {
    %c0_i32 = arith.constant 0 : i32
    %c0_i32_0 = arith.constant 0 : i32
    %c0_i32_1 = arith.constant 0 : i32
    return %c0_i32, %c0_i32_0 : i32, i32
  }
  func.func @transform_6(%arg0: i32) -> (i32, i32) {
    %c0_i32 = arith.constant 0 : i32
    %c0_i32_0 = arith.constant 0 : i32
    %c0_i32_1 = arith.constant 0 : i32
    return %c0_i32, %c0_i32_0 : i32, i32
  }
  func.func @transform_7(%arg0: i32) -> (i32, i32) {
    %c0_i32 = arith.constant 0 : i32
    %c0_i32_0 = arith.constant 0 : i32
    %c0_i32_1 = arith.constant 0 : i32
    return %c0_i32, %c0_i32_0 : i32, i32
  }
  func.func @transform_8(%arg0: i32) -> (i32, i32) {
    %c0_i32 = arith.constant 0 : i32
    %c0_i32_0 = arith.constant 0 : i32
    %c0_i32_1 = arith.constant 0 : i32
    return %c0_i32, %c0_i32_0 : i32, i32
  }
  func.func @transform_9(%arg0: i32) -> (i32, i32, i32) {
    %c0_i32 = arith.constant 0 : i32
    %c0_i32_0 = arith.constant 0 : i32
    %c0_i32_1 = arith.constant 0 : i32
    return %arg0, %c0_i32, %c0_i32_0 : i32, i32, i32
  }
}

</mosaic_0001>

<bundles_post_ra>
// kernel: stacked_lstm_sequence.1
= control target key start
LH: loop header
LB: loop body
LE: loop exit
PB: predicated region body
PF: predicated region fallthrough
CT: control target
= control target key end

     0   :  { %s1651_s0 = inlined_call_operand.hbm [shape: f32[8,8,32], index: 0, kind: input, shape index: {}]   ;;  %s1652_s1 = inlined_call_operand.hbm [shape: f32[2,8,32], index: 1, kind: input, shape index: {}]   ;;  %s1653_s2 = inlined_call_operand.hbm [shape: f32[2,8,32], index: 2, kind: input, shape index: {}]   ;;  %s1654_s3 = inlined_call_operand.hbm [shape: bf16[32,128], index: 3, kind: input, shape index: {}]   ;;  %s1655_s4 = inlined_call_operand.hbm [shape: bf16[32,128], index: 4, kind: input, shape index: {}]   ;;  %s1656_s5 = inlined_call_operand.hbm [shape: f32[1,128], index: 5, kind: input, shape index: {}]   ;;  %s1657_s6 = inlined_call_operand.hbm [shape: bf16[32,128], index: 6, kind: input, shape index: {}]   ;;  %s1658_s7 = inlined_call_operand.hbm [shape: bf16[32,128], index: 7, kind: input, shape index: {}]   ;;  %s1659_s8 = inlined_call_operand.vmem [shape: f32[1,128], index: 8, kind: input, shape index: {}]   ;;  %s1660_s9 = inlined_call_operand.vmem [shape: f32[8,8,128], index: 9, kind: output, shape index: {}]  }
   0x1   :  { %1661 = sst [smem:[#allocation22_spill]] %s1652_s1 }
   0x2   :  { %1662 = sst [smem:[#allocation23_spill]] %s1654_s3 }
   0x3   :  { %1663 = sst [smem:[#allocation24_spill]] %s1659_s8 }
   0x4   :  { %14 = vsyncpa [#allocation5], 0 }
   0x5   :  { %16 = vsyncpa [#allocation5 + $0x1], 0 }
   0x6   :  { %17 = vsyncpa [#allocation7], 0 }
   0x7   :  { %18 = vsyncpa [#allocation10], 0 }
   0x8   :  { %19 = vsyncpa [#allocation13], 0 }
   0x9   :  { %20 = vsyncpa [#allocation16], 0  ;;  %s1443_s30 = smov 0   ;;  %s1445_s10 = smov 0  }
   0xa   :  { %s1447_s11 = smov 0   ;;  %s1449_s12 = smov 0  }
   0xb LB: > { %s1664_s1 = sld [smem:[#allocation22_spill]]  ;;  %s1467_s16 = sadd.s32 4294967295, %s1377_s12   ;;  %s1377_s12 = sphi %s1449_s12, %s1674_s12   ;;  %s1373_s11 = sphi %s1447_s11, %s1673_s11   ;;  %s1369_s10 = sphi %s1445_s10, %s1672_s10   ;;  %s1365_s30 = sphi %s1443_s30, %s1671_s30  }
   0xc   : > { %p882_p0 = scmp.ge.s32.totalorder %s1377_s12, 1  ;;  %p47_p1 = scmp.eq.s32.totalorder %s1467_s16, 0 }
   0xd   : > { %p251_p2 = scmp.lt.s32.totalorder %s1377_s12, 9  ;;  %p883_p3 = scmp.ne.s32.totalorder %s1467_s16, 0 }
   0xe   : > { %s1379_s18 = smov [#allocation6]   ;;  %s1666_s3 = sld [smem:[#allocation23_spill]] }
   0xf   : > { %p1473_p4 = pnand %p882_p0, %p251_p2  ;;  %s264_s19 = sshll.u32 %s1379_s18, 4  ;;  %s265_s19 = int_to_ptr.vmem [resolvable:$true] %s264_s19 }
  0x10   : > { %s1380_s24 = smov [#allocation9]   ;;  %s1381_s26 = smov 128  }
  0x11   : > { %s262_s15 = sshll.u32 %s1664_s1, 4  ;;  %p982_p5 = pneg %p1473_p4  ;;  %s263_s15 = int_to_ptr.hbm [resolvable:$true] %s262_s15 }
  0x12   : > { %s292_s25 = sshll.u32 %s1380_s24, 4  ;;  %s1382_s27 = smov 8   ;;  %s293_s25 = int_to_ptr.vmem [resolvable:$true] %s292_s25 }
  0x13   : > { %p1484_p6 = pnand %p982_p5, %p47_p1  ;;  %s1383_s28 = smov 64  }
  0x14   : > { %s290_s22 = sshll.u32 %s1666_s3, 4  ;;  %s1384_s29 = smov 4   ;;  %s291_s22 = int_to_ptr.hbm [resolvable:$true] %s290_s22 }
  0x15   : > { %985 = dma.hbm_to_vmem [thread:$0]  (!%p1484_p6), %s263_s15, 256, %s265_s19, [#allocation7], %s1381_s26, %s1381_s26, %s1382_s27  }
  0x16   : > { %991 = dma.hbm_to_vmem [thread:$0]  (!%p1484_p6), %s291_s22, 256, %s293_s25, [#allocation10], %s1383_s28, %s1383_s28, %s1384_s29  }
  0x17   : > { %s319_s18 = sshll.u32 %s1656_s5, 4  ;;  %s1385_s20 = smov [#allocation12]   ;;  %s320_s18 = int_to_ptr.hbm [resolvable:$true] %s319_s18 }
  0x18   : > { %s321_s21 = sshll.u32 %s1385_s20, 4  ;;  %s276_s19 = sshll.u32 %s1653_s2, 4  ;;  %s322_s21 = int_to_ptr.vmem [resolvable:$true] %s321_s21  ;;  %s277_s19 = int_to_ptr.hbm [resolvable:$true] %s276_s19 }
  0x19   : > { %997 = dma.hbm_to_vmem [thread:$0]  (!%p1484_p6), %s320_s18, 16, %s322_s21, [#allocation13]  }
  0x1a   : > { %s1386_s1 = smov [#allocation8]   ;;  %s304_s25 = sshll.u32 %s1655_s4, 4  ;;  %s305_s25 = int_to_ptr.hbm [resolvable:$true] %s304_s25 }
  0x1b   : > { %s278_s3 = sshll.u32 %s1386_s1, 4  ;;  %s330_s20 = sshll.u32 %s1657_s6, 4  ;;  %s279_s3 = int_to_ptr.vmem [resolvable:$true] %s278_s3  ;;  %s331_s20 = int_to_ptr.hbm [resolvable:$true] %s330_s20 }
  0x1c   : > { %988 = dma.hbm_to_vmem [thread:$0]  (!%p1484_p6), %s277_s19, 256, %s279_s3, [#allocation7], %s1381_s26, %s1381_s26, %s1382_s27  }
  0x1d   : > { %s1387_s24 = smov [#allocation11]   ;;  %s1388_s1 = smov [#allocation14]  }
  0x1e   : > { %s306_s18 = sshll.u32 %s1387_s24, 4  ;;  %s332_s3 = sshll.u32 %s1388_s1, 4  ;;  %s307_s18 = int_to_ptr.vmem [resolvable:$true] %s306_s18  ;;  %s333_s3 = int_to_ptr.vmem [resolvable:$true] %s332_s3 }
  0x1f   : > { %994 = dma.hbm_to_vmem [thread:$0]  (!%p1484_p6), %s305_s25, 256, %s307_s18, [#allocation10], %s1383_s28, %s1383_s28, %s1384_s29  }
  0x20   : > { %s344_s27 = sshll.u32 %s1658_s7, 4  ;;  %s1389_s21 = smov [#allocation15]   ;;  %s345_s27 = int_to_ptr.hbm [resolvable:$true] %s344_s27 }
  0x21   : > { %1000 = dma.hbm_to_vmem [thread:$0]  (!%p1484_p6), %s331_s20, 256, %s333_s3, [#allocation13], %s1383_s28, %s1383_s28, %s1384_s29  }
  0x22   : > { %s346_s15 = sshll.u32 %s1389_s21, 4  ;;  %s1530_s19 = sadd.s32 1, %s1377_s12   ;;  %s347_s15 = int_to_ptr.vmem [resolvable:$true] %s346_s15 }
  0x23   : > { %1003 = dma.hbm_to_vmem [thread:$0]  (!%p1484_p6), %s345_s27, 256, %s347_s15, [#allocation16], %s1383_s28, %s1383_s28, %s1384_s29  }
  0x24   : > { %s30_s22 = ssub.s32 %s1377_s12, %s1530_s19  ;;  %s33_s25 = sadd.s32 1, %s1373_s11 }
  0x25   : > { %p31_p7 = scmp.eq.s32.totalorder %s30_s22, 0  ;;  %p40_p8 = scmp.ne.s32.totalorder %s1373_s11, %s1369_s10 }
  0x26   : > { %p41_p9 = scmp.eq.s32.totalorder %s1377_s12, 0  ;;  %p46_p10 = scmp.ne.s32.totalorder %s1369_s10, %s1365_s30 }
  0x27   : > { %s1541_s13 = scalar_select %p31_p7, %s1373_s11, %s33_s25  }
  0x28   : > { %p42_p11 = por %p41_p9, %p40_p8  ;;  %p1545_p12 = por %p47_p1, %p46_p10 }
  0x29   : > { %p1015_p13 = scmp.lt.s32.totalorder %s1377_s12, 8  ;;  %s363_s23 = sand.u32 1, %s1373_s11  }
  0x2a   : > { %s891_s28 = sshll.u32 %s363_s23, 3  ;;  %s892_s29 = sshll.u32 %s1377_s12, 3 }
  0x2b   : > { %s371_s18 = scalar_lea.hbm %s1651_s0, %s892_s29  ;;  %s367_s1 = scalar_lea.vmem [#allocation4], %s891_s28 }
  0x2c   : > { %s375_s3 = sshll.u32 %s367_s1, 4  ;;  %s373_s8 = sshll.u32 %s371_s18, 4  ;;  %s376_s3 = int_to_ptr.vmem [resolvable:$true] %s375_s3  ;;  %s374_s8 = int_to_ptr.hbm [resolvable:$true] %s373_s8 }
  0x2d   : > { %p1555_p0 = pnand %p1015_p13, %p42_p11  ;;  %s364_s26 = scalar_lea.sflag [#allocation5], %s363_s23 }
  0x2e   : > { %s1297_s27 = sshra.s32 %s374_s8, 4  ;;  %s1304_s22 = scalar_lea.hbm %s1651_s0, 64  ;;  %s1298_s27 = int_to_ptr.hbm [resolvable:$true] %s1297_s27 }
  0x2f   : > { %s1299_s21 = scalar_lea.hbm %s1298_s27, 8  ;;  %p1301_p5 = pneg %p1555_p0 }
  0x30   : > { %p1300_p2 = scmp.ne.s32.totalorder %s1298_s27, %s1299_s21  ;;  %p1305_p8 = scmp.lt.s32.totalorder %s1298_s27, %s1651_s0 }
  0x31   : > { %p1306_p9 = scmp.lt.s32.totalorder %s1304_s22, %s1299_s21 }
  0x32   : > { %p1302_p6 = pnand %p1301_p5, %p1300_p2 }
  0x33   : > { %p1307_p10 = por %p1306_p9, %p1305_p8 }
  0x34   : > { %p1303_p7 = pneg %p1302_p6 }
  0x36   : > { %p1308_p11 = pnand %p1307_p10, %p1303_p7 }
  0x38   : > { %1311 = shalt.err (!%p1308_p11)
}
  0x39   : > { %1007 = dma.hbm_to_vmem [thread:$0]  (!%p1555_p0), %s374_s8, 128, %s376_s3, %s364_s26  }
  0x3a   : > { %384 = sbr.rel (%p1473_p4) target bundleno = 1248 (0x4e0), region = 56  ;;  %s386_s23 = sand.u32 (!%p1473_p4), 1, %s1369_s10  }
  0x3b   : > { %s1572_s29 = sshll.u32 (!%p1473_p4), %s386_s23, 3  ;;  %s387_s20 = scalar_lea.sflag (!%p1473_p4), [#allocation5], %s386_s23 }
  0x3c   : > { %s390_s24 = scalar_lea.vmem (!%p1473_p4), [#allocation4], %s1572_s29 }
  0x3f   : > { %1344 = dma.done.wait (%p1545_p12), %s387_s20, 128  }
  0x40   : > { %1346 = vsyncadd (%p1545_p12), %s387_s20, 4294967168 }
  0x41   : > { %1348 = dma.done.wait (%p47_p1), [#allocation7], 512  }
  0x42   : > { %1350 = vsyncadd (%p47_p1), [#allocation7], 4294966784 }
  0x43   : > { %1352 = dma.done.wait (%p47_p1), [#allocation10], 512  }
  0x44   : > { %1354 = vsyncadd (%p47_p1), [#allocation10], 4294966784 }
  0x45   : > { %1356 = dma.done.wait (%p47_p1), [#allocation13], 272  }
  0x46   : > { %1358 = vsyncadd (%p47_p1), [#allocation13], 4294967024 }
  0x47   : > { %1360 = dma.done.wait (%p47_p1), [#allocation16], 256  }
  0x48   : > { %1362 = vsyncadd (%p47_p1), [#allocation16], 4294967040  ;;  %p460_p4 = scmp.lt.s32.totalorder %s1467_s16, 7 }
  0x49   : > { %468 = sbr.rel (%p883_p3) target bundleno = 83 (0x53), region = 92 }
  0x4a   : > { %s461_s17 = scalar_select %p460_p4, %s1467_s16, 7 }
  0x4c   : > { %s902_s14 = sshll.u32 %s461_s17, 3 }
  0x4d   : > { %s1600_s3 = scalar_lea.vmem %s1660_s9, %s902_s14 }
  0x4e   : > { %v469_v0 = vld [vmem:[#allocation6] sm:$0xff]  ;;  %vm471_vm0 = vcmask 261120   ;;  %v470_v1 = vld [vmem:[#allocation6 + $0x8] sm:$0xff]  ;;  %v474_v2 = vld [vmem:[#allocation8] sm:$0xff] }
  0x4f   : > { %472 = vst.msk [vmem:[#allocation2] sm:$0xff] %vm471_vm0, %v469_v0  ;;  %v475_v3 = vld [vmem:[#allocation8 + $0x8] sm:$0xff] }
  0x50   : > { %473 = vst.msk [vmem:[#allocation2 + $0x8] sm:$0xff] %vm471_vm0, %v470_v1 }
  0x51   : > { %476 = vst.msk [vmem:[#allocation3] sm:$0xff] %vm471_vm0, %v474_v2 }
  0x52   : > { %477 = vst.msk [vmem:[#allocation3 + $0x8] sm:$0xff] %vm471_vm0, %v475_v3 }
  0x53 PF: > { %v947_v4 = vld [vmem:[#allocation11 + $0x8] sm:$0xff]  ;;  %v945_v5 = vld [vmem:[#allocation9 + $0x8] sm:$0xff]  ;;  %v946_v6 = vld [vmem:[#allocation11] sm:$0xff]  ;;  %vm503_vm1 = vcmask 261120   ;;  %s1390_s16 = smov 32   ;;  %s1391_s8 = smov 64  }
  0x54   : > { %v944_v7 = vld [vmem:[#allocation9] sm:$0xff]  ;;  %513 = vmatpush.bf16.msra.mxu0 %v947_v4  ;;  %541 = vmatpush.bf16.msra.mxu1 %v945_v5  ;;  %v478_v9 = vld [vmem:[%s390_s24] sm:$0xff]  ;;  %s1392_s30 = smov 96   ;;  %s1670_s21 = sld [smem:[#allocation24_spill]]  ;;  %vm608_vm10 = vcmask 785920   ;;  %vm742_vm11 = vcmask 523520  }
  0x55   : > { %v479_v11 = vpack.c.bf16 %v478_v9, %v478_v9  ;;  %v1069_v12 = vld [vmem:[#allocation12] ss:$0 sm:$0xff]  ;;  %v949_v43 = vld [vmem:[#allocation14 + $0x8] sm:$0xff]  ;;  %v950_v44 = vld [vmem:[#allocation15] sm:$0xff]  ;;  %vm747_vm12 = vcmask 1048320  }
  0x56   : > { %v480_v8 = vld [vmem:[#allocation2] sm:$0xff]  ;;  %v951_v42 = vld [vmem:[#allocation15 + $0x8] sm:$0xff]  ;;  %676 = vmatpush.bf16.msra.mxu3 %v949_v43  ;;  %v948_v46 = vld [vmem:[#allocation14] sm:$0xff] }
  0x57   : > { %v486_v10 = vpack.c.bf16 %v480_v8, %v480_v8  ;;  %645 = vmatpush.bf16.msra.mxu2 %v951_v42  ;;  %v612_v45 = vld [vmem:[#allocation2 + $0x8] sm:$0xff] }
  0x58   : > { %514 = vmatpush.bf16.msra.mxu0 %v946_v6  ;;  %542 = vmatpush.bf16.msra.mxu1 %v944_v7  ;;  %v481_v20 = vld [vmem:[#allocation3] sm:$0xff]  ;;  %v619_v47 = vpack.c.bf16 %v612_v45, %v612_v45 }
  0x59   : > { %v614_v36 = vld [vmem:[#allocation3 + $0x8] sm:$0xff] }
  0x5a   : > { %677 = vmatpush.bf16.msra.mxu3 %v948_v46  ;;  %v1070_v57 = vld [vmem:[%s1670_s21] ss:$0 sm:$0xff] }
  0x5b   : > { %912 = vmatmul.msk.bf16.vlgmr.msra.gmra.mxu0 %vm503_vm1, %v486_v10  ;;  %921 = vmatmul.msk.bf16.vlgmr.msra.gmra.mxu1 %vm503_vm1, %v479_v11 }
  0x5c   : > { %646 = vmatpush.bf16.msra.mxu2 %v950_v44 }
  0x5f   : > { %931 = vmatmul.msk.bf16.vlgmr.msra.gmra.mxu2 %vm503_vm1, %v619_v47 }
  0xd8   : > { %v516_v13 = vpop.f32.mrf.mxu0  ;;  %v544_v14 = vpop.f32.mrf.mxu1 }
  0xd9   : > { %v545_v15 = vadd.f32 %v544_v14, %v516_v13 }
  0xdb   : > { %v552_v16 = vadd.f32 %v1069_v12, %v545_v15 }
  0xdd   : > { %1071 = vtanh.f32 %v552_v16  ;;  %v922_v21 = vmul.f32 -1.442695, %v552_v16 }
  0xdf   : > { %1073 = vpow2.f32 %v922_v21 }
  0xe0   : > { %v518_v17 = vpop.f32.mrf.mxu0  ;;  %v546_v18 = vpop.f32.mrf.mxu1 }
  0xe2   : > { %v648_v54 = vpop.f32.mrf.mxu2 }
  0xe3   : > { %v1072_v19 = vpop.eup %1071 }
  0xe4   : > { %579 = vrot.lane.b32.xlu0 %v1072_v19, %s1390_s16 }
  0xe5   : > { %v1074_v22 = vpop.eup %1073 }
  0xe6   : > { %v556_v23 = vadd.f32 1.0, %v1074_v22 }
  0xe8   : > { %1075 = vrcp.f32 %v556_v23  ;;  %v568_v29 = vand.u32 2147483648, %v556_v23  ;;  %vm562_vm3 = vweird.f32 %v556_v23  ;;  %v566_v30 = vand.u32 2147483647, %v556_v23 }
  0xea   : > { %v569_v32 = vor.u32 1.1754944e-38, %v568_v29  ;;  %vm567_vm5 = vcmp.eq.f32.partialorder %v566_v30, 8.507059e+37  ;;  %v650_v56 = vpop.f32.mrf.mxu2 }
  0xec   : > { %574 = vrot.lane.b32.xlu0 %v481_v20, %s1390_s16 }
  0xee   : > { %v1076_v24 = vpop.eup %1075 }
  0xef   : > { %v558_v25 = vmul.f32 %v1076_v24, %v556_v23  ;;  %vm563_vm2 = vweird.f32 %v1076_v24 }
  0xf0   : > { %vm564_vm4 = vmor %vm562_vm3, %vm563_vm2 }
  0xf1   : > { %v559_v26 = vsub.f32 1.0, %v558_v25 }
  0xf3   : > { %v560_v27 = vmul.f32 %v1076_v24, %v559_v26 }
  0xf4   : > { %709 = vrot.lane.b32.xlu0 %v614_v36, %s1390_s16 }
  0xf5   : > { %v561_v28 = vadd.f32 %v1076_v24, %v560_v27 }
  0xf7   : > { %v565_v31 = vsel %vm564_vm4, %v1076_v24, %v561_v28 }
  0xf8   : > { %v570_v34 = vsel %vm567_vm5, %v569_v32, %v565_v31 }
 0x156   : > { %v580_v33 = vpop.permute.xlu0 %579 }
 0x157   : > { %v582_v35 = vmul.f32 %v580_v33, %v570_v34 }
 0x159   : > { %584 = vrot.lane.b32.xlu1 %v582_v35, %s1390_s16 }
 0x15e   : > { %v575_v37 = vpop.permute.xlu0 %574 }
 0x15f   : > { %v577_v38 = vmul.f32 %v575_v37, %v570_v34 }
 0x166   : > { %v710_v52 = vpop.permute.xlu0 %709 }
 0x1cb   : > { %v585_v39 = vpop.permute.xlu1 %584 }
 0x1cc   : > { %v587_v40 = vadd.f32 %v585_v39, %v577_v38 }
 0x1ce   : > { %1077 = vtanh.f32 %v587_v40 }
 0x1d4   : > { %v1078_v41 = vpop.eup %1077 }
 0x1d5   : > { %590 = vrot.lane.b32.xlu1 %v1078_v41, %s1390_s16 }
 0x247   : > { %v591_v48 = vpop.permute.xlu1 %590 }
 0x248   : > { %v593_v49 = vmul.f32 %v591_v48, %v570_v34 }
 0x24a   : > { %595 = vrot.lane.b32.xlu0 %v593_v49, %s1391_s8  ;;  %v610_v50 = vpack.c.bf16 %v593_v49, %v593_v49 }
 0x24c   : > { %653 = vrot.lane.b32.xlu2 %v610_v50, %s1391_s8 }
 0x252   : > { %600 = vrot.lane.b32.xlu0 %v587_v40, %s1392_s30 }
 0x2a6   : > { %v654_v51 = vpop.permute.xlu2 %653 }
 0x2a7   : > { %940 = vmatmul.msk.bf16.vlgmr.msra.gmra.mxu3 %vm503_vm1, %v654_v51 }
 0x2bc   : > { %v596_v53 = vpop.permute.xlu0 %595 }
 0x2bd   : > { %598 = vst.msk [vmem:[#allocation2] sm:$0xff] %vm503_vm1, %v596_v53 }
 0x2be   : > { %604 = vst.msk [vmem:[%s1600_s3] sm:$0xff] %vm503_vm1, %v596_v53 }
 0x2c4   : > { %v601_v55 = vpop.permute.xlu0 %600 }
 0x2c5   : > { %603 = vst.msk [vmem:[#allocation3] sm:$0xff] %vm503_vm1, %v601_v55 }
 0x32a   : > { %v679_v58 = vpop.f32.mrf.mxu3 }
 0x32b   : > { %v680_v59 = vadd.f32 %v679_v58, %v648_v54 }
 0x32d   : > { %v687_v60 = vadd.f32 %v1070_v57, %v680_v59 }
 0x32f   : > { %1079 = vtanh.f32 %v687_v60  ;;  %v941_v63 = vmul.f32 -1.442695, %v687_v60 }
 0x331   : > { %1081 = vpow2.f32 %v941_v63 }
 0x332   : > { %v681_v61 = vpop.f32.mrf.mxu3 }
 0x335   : > { %v1080_v62 = vpop.eup %1079 }
 0x336   : > { %714 = vrot.lane.b32.xlu2 %v1080_v62, %s1390_s16 }
 0x337   : > { %v1082_v0 = vpop.eup %1081 }
 0x338   : > { %v691_v1 = vadd.f32 1.0, %v1082_v0 }
 0x33a   : > { %1083 = vrcp.f32 %v691_v1  ;;  %v703_v7 = vand.u32 2147483648, %v691_v1  ;;  %vm697_vm7 = vweird.f32 %v691_v1  ;;  %v701_v8 = vand.u32 2147483647, %v691_v1 }
 0x33c   : > { %v704_v10 = vor.u32 1.1754944e-38, %v703_v7  ;;  %vm702_vm9 = vcmp.eq.f32.partialorder %v701_v8, 8.507059e+37 }
 0x340   : > { %v1084_v2 = vpop.eup %1083 }
 0x341   : > { %v693_v3 = vmul.f32 %v1084_v2, %v691_v1  ;;  %vm698_vm6 = vweird.f32 %v1084_v2 }
 0x342   : > { %vm699_vm8 = vmor %vm697_vm7, %vm698_vm6 }
 0x343   : > { %v694_v4 = vsub.f32 1.0, %v693_v3 }
 0x345   : > { %v695_v5 = vmul.f32 %v1084_v2, %v694_v4 }
 0x347   : > { %v696_v6 = vadd.f32 %v1084_v2, %v695_v5 }
 0x349   : > { %v700_v9 = vsel %vm699_vm8, %v1084_v2, %v696_v6 }
 0x34a   : > { %v705_v12 = vsel %vm702_vm9, %v704_v10, %v700_v9 }
 0x34b   : > { %v712_v14 = vmul.f32 %v710_v52, %v705_v12 }
 0x390   : > { %v715_v11 = vpop.permute.xlu2 %714 }
 0x391   : > { %v717_v13 = vmul.f32 %v715_v11, %v705_v12 }
 0x393   : > { %719 = vrot.lane.b32.xlu1 %v717_v13, %s1390_s16 }
 0x39b   : > { %605 = vrot.lane.b32.xlu1 %v587_v40, %s1390_s16 }
 0x405   : > { %v720_v15 = vpop.permute.xlu1 %719 }
 0x406   : > { %v722_v16 = vadd.f32 %v720_v15, %v712_v14 }
 0x408   : > { %1085 = vtanh.f32 %v722_v16  ;;  %744 = vrot.lane.b32.xlu0 %v722_v16, %s1391_s8 }
 0x40d   : > { %v606_v17 = vpop.permute.xlu1 %605 }
 0x40e   : > { %v1086_v18 = vpop.eup %1085  ;;  %609 = vst.msk [vmem:[%s1600_s3] sm:$0xff] %vm608_vm10, %v606_v17 }
 0x40f   : > { %725 = vrot.lane.b32.xlu2 %v1086_v18, %s1390_s16 }
 0x469   : > { %v726_v19 = vpop.permute.xlu2 %725 }
 0x46a   : > { %v728_v20 = vmul.f32 %v726_v19, %v705_v12 }
 0x46c   : > { %730 = vrot.lane.b32.xlu1 %v728_v20, %s1391_s8  ;;  %739 = vrot.lane.b32.xlu2 %v728_v20, %s1392_s30 }
 0x474   : > { %735 = vrot.lane.b32.xlu2 %v722_v16, %s1392_s30 }
 0x47a   : > { %v745_v22 = vpop.permute.xlu0 %744 }
 0x4c6   : > { %v740_v21 = vpop.permute.xlu2 %739 }
 0x4c7   : > { %743 = vst.msk [vmem:[%s1600_s3] sm:$0xff] %vm742_vm11, %v740_v21 }
 0x4c8   : > { %748 = vst.msk [vmem:[%s1600_s3] sm:$0xff] %vm747_vm12, %v745_v22 }
 0x4ce   : > { %v736_v23 = vpop.permute.xlu2 %735 }
 0x4cf   : > { %738 = vst.msk [vmem:[#allocation3 + $0x8] sm:$0xff] %vm503_vm1, %v736_v23 }
 0x4de   : > { %v731_v24 = vpop.permute.xlu1 %730 }
 0x4df   : > { %733 = vst.msk [vmem:[#allocation2 + $0x8] sm:$0xff] %vm503_vm1, %v731_v24 }
 0x4e0 PF: > { %p23_p1 = scmp.ge.s32.totalorder %s1530_s19, 10   ;;  %s1671_s30 = smov %s1369_s10 }
 0x4e1   : > { %s1672_s10 = smov %s1373_s11  ;;  %s1673_s11 = smov %s1541_s13 }
 0x4e2   : > { %s1674_s12 = smov %s1530_s19  ;;  %25 = sbr.rel (!%p23_p1) target bundleno = 11 (0xb), region = 130 }
 0x4e7   :  { %768 = vsyncpa [#allocation5], 1 }
 0x4e8   :  { %770 = vsyncpa [#allocation5 + $0x1], 1 }
 0x4e9   :  { %771 = vsyncpa [#allocation7], 1 }
 0x4ea   :  { %772 = vsyncpa [#allocation10], 1 }
 0x4eb   :  { %773 = vsyncpa [#allocation13], 1 }
 0x4ec   :  { %774 = vsyncpa [#allocation16], 1 }

</bundles_post_ra>
